<compile_context>
chip_gen: v7x
topology: tpu7x:2x2x1
jax: 0.10.0
libtpu: 0.0.40
codegen_flags: <defaults>
</compile_context>

<pallas_src>
import jax
import jax.numpy as jnp
from jax.experimental import pallas as pl
from jax.experimental.pallas import tpu as pltpu


def _round_up(x, m):
    return (x + m - 1) // m * m


# ---------------- Stage 1: streaming global-average-pool (sums) ----------------

def _pool_kernel(x1_ref, x2_ref, s1_ref, s2_ref):
    # x*_ref: (TILE_BC, TILE_HW); s*_ref: (TILE_BC, 1) accumulators resident
    # across the HW (reduction / "arbitrary") grid axis.
    @pl.when(pl.program_id(1) == 0)
    def _():
        s1_ref[...] = jnp.zeros_like(s1_ref)
        s2_ref[...] = jnp.zeros_like(s2_ref)

    s1_ref[...] += jnp.sum(x1_ref[...].astype(jnp.float32), axis=-1, keepdims=True)
    s2_ref[...] += jnp.sum(x2_ref[...].astype(jnp.float32), axis=-1, keepdims=True)


# ---------------- Stage 3: streaming elementwise apply ----------------

def _apply_kernel(x1_ref, x2_ref, g1_ref, g2_ref, o1_ref, o2_ref):
    x1 = x1_ref[...]                       # (TILE_BC, TILE_HW)
    x2 = x2_ref[...]
    g1 = g1_ref[...]                       # (TILE_BC, 1): sigmoid gate + 0.5 (residual folded)
    g2 = g2_ref[...]                       # (TILE_BC, 1): sigmoid gate
    o1_ref[...] = (x1 * g1).astype(o1_ref.dtype)
    o2_ref[...] = (x1 * g2 + 0.5 * x2).astype(o2_ref.dtype)


def rescross_se(x1, x2, w1, w2, *, tile_hw=512, tile_bc=256):
    """x1, x2: (B, C, H, W).  w1: (C//r, C), w2: (C, C//r) (torch nn.Linear layout)."""
    b, c, h, w = x1.shape
    hw = h * w
    bc = b * c
    dtype = x1.dtype
    elem = jnp.dtype(dtype).itemsize

    # Fold batch into the sublane axis (C may be < 8), spatial on the lane axis.
    x1f = x1.reshape(bc, hw)
    x2f = x2.reshape(bc, hw)

    # Lane-dense / sublane-dense tiling (multiples of 128 / 8), padded if needed.
    tile_hw = min(tile_hw, _round_up(hw, 128))
    tile_bc = min(tile_bc, _round_up(bc, 8))
    hw_p = _round_up(hw, tile_hw)
    bc_p = _round_up(bc, tile_bc)
    if (bc_p, hw_p) != (bc, hw):
        x1f = jnp.pad(x1f, ((0, bc_p - bc), (0, hw_p - hw)))
        x2f = jnp.pad(x2f, ((0, bc_p - bc), (0, hw_p - hw)))

    grid_bc = bc_p // tile_bc
    grid_hw = hw_p // tile_hw

    # ---- Stage 1: pooled sums (zero padding keeps sums exact; divide by true hw) ----
    s1_sum, s2_sum = pl.pallas_call(
        _pool_kernel,
        out_shape=(
            jax.ShapeDtypeStruct((bc_p, 1), jnp.float32),
            jax.ShapeDtypeStruct((bc_p, 1), jnp.float32),
        ),
        grid=(grid_bc, grid_hw),
        in_specs=[
            pl.BlockSpec((tile_bc, tile_hw), lambda i, j: (i, j)),
            pl.BlockSpec((tile_bc, tile_hw), lambda i, j: (i, j)),
        ],
        out_specs=(
            pl.BlockSpec((tile_bc, 1), lambda i, j: (i, 0)),
            pl.BlockSpec((tile_bc, 1), lambda i, j: (i, 0)),
        ),
        compiler_params=pltpu.CompilerParams(
            dimension_semantics=("parallel", "arbitrary")),
        cost_estimate=pl.CostEstimate(
            flops=2 * bc_p * hw_p,
            transcendentals=0,
            bytes_accessed=2 * bc_p * hw_p * elem),
    )(x1f, x2f)

    # ---- Stage 2: tiny FC gate path (B*C work) in plain JAX, f32 ----
    inv_hw = jnp.float32(1.0 / hw)
    y1 = (s1_sum[:bc, 0] * inv_hw).reshape(b, c)
    y2 = (s2_sum[:bc, 0] * inv_hw).reshape(b, c)

    w1f = jnp.asarray(w1, jnp.float32)   # (Cr, C)
    w2f = jnp.asarray(w2, jnp.float32)   # (C, Cr)

    def fc(y):
        hid = jnp.maximum(y @ w1f.T, 0.0)
        return jax.nn.sigmoid(hid @ w2f.T)

    # Cross-wired gates exactly as in the PyTorch forward.
    gate1 = fc(y2) + 0.5                 # applied to x1 in out1 (0.5*x1 residual folded in)
    gate2 = fc(y1)                       # applied to x1 in out2

    g1 = jnp.pad(gate1.reshape(bc, 1), ((0, bc_p - bc), (0, 0))).astype(dtype)
    g2 = jnp.pad(gate2.reshape(bc, 1), ((0, bc_p - bc), (0, 0))).astype(dtype)

    # ---- Stage 3: streaming apply, both grid axes parallel (megacore on v7x) ----
    out1, out2 = pl.pallas_call(
        _apply_kernel,
        out_shape=(
            jax.ShapeDtypeStruct((bc_p, hw_p), dtype),
            jax.ShapeDtypeStruct((bc_p, hw_p), dtype),
        ),
        grid=(grid_bc, grid_hw),
        in_specs=[
            pl.BlockSpec((tile_bc, tile_hw), lambda i, j: (i, j)),
            pl.BlockSpec((tile_bc, tile_hw), lambda i, j: (i, j)),
            pl.BlockSpec((tile_bc, 1), lambda i, j: (i, 0)),
            pl.BlockSpec((tile_bc, 1), lambda i, j: (i, 0)),
        ],
        out_specs=(
            pl.BlockSpec((tile_bc, tile_hw), lambda i, j: (i, j)),
            pl.BlockSpec((tile_bc, tile_hw), lambda i, j: (i, j)),
        ),
        compiler_params=pltpu.CompilerParams(
            dimension_semantics=("parallel", "parallel")),
        cost_estimate=pl.CostEstimate(
            flops=3 * bc_p * hw_p,
            transcendentals=0,
            bytes_accessed=4 * bc_p * hw_p * elem),
    )(x1f, x2f, g1, g2)

    out1 = out1[:bc, :hw].reshape(b, c, h, w)
    out2 = out2[:bc, :hw].reshape(b, c, h, w)
    return out1, out2


def rescross_se_ref(x1, x2, w1, w2):
    """Pure-JAX reference mirroring the PyTorch forward."""
    b, c, _, _ = x1.shape
    y1 = jnp.mean(x1, axis=(2, 3))
    y2 = jnp.mean(x2, axis=(2, 3))

    def fc(y):
        hid = jnp.maximum(y @ w1.T, 0.0)
        return jax.nn.sigmoid(hid @ w2.T)

    s1 = fc(y2).reshape(b, c, 1, 1)
    s2 = fc(y1).reshape(b, c, 1, 1)
    # NOTE: out2 gates x1 (not x2) — this faithfully mirrors the provided PyTorch code.
    out1 = x1 * s1 + x1 * 0.5
    out2 = x1 * s2 + x2 * 0.5
    return out1, out2


if __name__ == "__main__":
    B, C, H, W = 2, 4, 16, 16
    reduction = 1
    Cr = C // reduction

    key = jax.random.PRNGKey(0)
    k1, k2, k3, k4 = jax.random.split(key, 4)
    x1 = jax.random.normal(k1, (B, C, H, W), dtype=jnp.float32)
    x2 = jax.random.normal(k2, (B, C, H, W), dtype=jnp.float32)
    # torch nn.Linear layout: (out_features, in_features)
    w1 = jax.random.normal(k3, (Cr, C), dtype=jnp.float32) * 0.1
    w2 = jax.random.normal(k4, (C, Cr), dtype=jnp.float32) * 0.1

    out1, out2 = rescross_se(x1, x2, w1, w2)
    jax.block_until_ready((out1, out2))

    ref1, ref2 = rescross_se_ref(x1, x2, w1, w2)
    assert jnp.allclose(out1, ref1, atol=1e-5, rtol=1e-5)
    assert jnp.allclose(out2, ref2, atol=1e-5, rtol=1e-5)

    print("KERNEL_OK")
</pallas_src>

<mosaic_0001>
module attributes {stable_mosaic.version = 11 : i64} {
  func.func @_pool_kernel(%arg0: i32, %arg1: i32, %arg2: memref<8x256xf32, #tpu.memory_space<vmem>>, %arg3: memref<8x256xf32, #tpu.memory_space<vmem>>, %arg4: memref<8x1xf32, #tpu.memory_space<vmem>>, %arg5: memref<8x1xf32, #tpu.memory_space<vmem>>) attributes {dimension_semantics = [#tpu.dimension_semantics<parallel>, #tpu.dimension_semantics<arbitrary>], iteration_bounds = array<i64: 1, 1>, scalar_prefetch = 0 : i64, scratch_operands = 0 : i64, tpu.core_type = #tpu.core_type<tc>, window_params = [{transform_indices = @transform_0, window_bounds = array<i64: 8, 256>}, {transform_indices = @transform_1, window_bounds = array<i64: 8, 256>}, {transform_indices = @transform_2, window_bounds = array<i64: 8, 1>}, {transform_indices = @transform_3, window_bounds = array<i64: 8, 1>}]} {
    %c0_i32 = arith.constant 0 : i32
    %0 = arith.cmpi eq, %arg1, %c0_i32 : i32
    %1 = arith.extui %0 : i1 to i32
    %c0_i32_0 = arith.constant 0 : i32
    %2 = arith.cmpi ne, %1, %c0_i32_0 : i32
    scf.if %2 {
      %cst_13 = arith.constant 0.000000e+00 : f32
      %15 = vector.broadcast %cst_13 : f32 to vector<8x1xf32>
      %c0_14 = arith.constant 0 : index
      %c0_15 = arith.constant 0 : index
      %16 = vector.load %arg4[%c0_14, %c0_15] : memref<8x1xf32, #tpu.memory_space<vmem>>, vector<8x1xf32>
      tpu.vector_store %arg4[%c0_14, %c0_15], %15 {strides = array<i32>} : memref<8x1xf32, #tpu.memory_space<vmem>>, vector<8x1xf32>,
      %cst_16 = arith.constant 0.000000e+00 : f32
      %17 = vector.broadcast %cst_16 : f32 to vector<8x1xf32>
      %c0_17 = arith.constant 0 : index
      %c0_18 = arith.constant 0 : index
      %18 = vector.load %arg5[%c0_17, %c0_18] : memref<8x1xf32, #tpu.memory_space<vmem>>, vector<8x1xf32>
      tpu.vector_store %arg5[%c0_17, %c0_18], %17 {strides = array<i32>} : memref<8x1xf32, #tpu.memory_space<vmem>>, vector<8x1xf32>,
    } else {
    }
    %c0 = arith.constant 0 : index
    %c0_1 = arith.constant 0 : index
    %3 = vector.load %arg4[%c0, %c0_1] : memref<8x1xf32, #tpu.memory_space<vmem>>, vector<8x1xf32>
    %c0_2 = arith.constant 0 : index
    %c0_3 = arith.constant 0 : index
    %4 = vector.load %arg2[%c0_2, %c0_3] : memref<8x256xf32, #tpu.memory_space<vmem>>, vector<8x256xf32>
    %cst = arith.constant dense<0.000000e+00> : vector<8xf32>
    %5 = vector.multi_reduction <add>, %4, %cst [1] : vector<8x256xf32> to vector<8xf32>
    %6 = vector.shape_cast %5 : vector<8xf32> to vector<8x1xf32>
    %7 = arith.addf %3, %6 : vector<8x1xf32>
    %c0_4 = arith.constant 0 : index
    %c0_5 = arith.constant 0 : index
    %8 = vector.load %arg4[%c0_4, %c0_5] : memref<8x1xf32, #tpu.memory_space<vmem>>, vector<8x1xf32>
    tpu.vector_store %arg4[%c0_4, %c0_5], %7 {strides = array<i32>} : memref<8x1xf32, #tpu.memory_space<vmem>>, vector<8x1xf32>,
    %c0_6 = arith.constant 0 : index
    %c0_7 = arith.constant 0 : index
    %9 = vector.load %arg5[%c0_6, %c0_7] : memref<8x1xf32, #tpu.memory_space<vmem>>, vector<8x1xf32>
    %c0_8 = arith.constant 0 : index
    %c0_9 = arith.constant 0 : index
    %10 = vector.load %arg3[%c0_8, %c0_9] : memref<8x256xf32, #tpu.memory_space<vmem>>, vector<8x256xf32>
    %cst_10 = arith.constant dense<0.000000e+00> : vector<8xf32>
    %11 = vector.multi_reduction <add>, %10, %cst_10 [1] : vector<8x256xf32> to vector<8xf32>
    %12 = vector.shape_cast %11 : vector<8xf32> to vector<8x1xf32>
    %13 = arith.addf %9, %12 : vector<8x1xf32>
    %c0_11 = arith.constant 0 : index
    %c0_12 = arith.constant 0 : index
    %14 = vector.load %arg5[%c0_11, %c0_12] : memref<8x1xf32, #tpu.memory_space<vmem>>, vector<8x1xf32>
    tpu.vector_store %arg5[%c0_11, %c0_12], %13 {strides = array<i32>} : memref<8x1xf32, #tpu.memory_space<vmem>>, vector<8x1xf32>,
    return
  }
  func.func @transform_0(%arg0: i32, %arg1: i32) -> (i32, i32) {
    %c0_i32 = arith.constant 0 : i32
    return %arg0, %arg1 : i32, i32
  }
  func.func @transform_1(%arg0: i32, %arg1: i32) -> (i32, i32) {
    %c0_i32 = arith.constant 0 : i32
    return %arg0, %arg1 : i32, i32
  }
  func.func @transform_2(%arg0: i32, %arg1: i32) -> (i32, i32) {
    %c0_i32 = arith.constant 0 : i32
    %c0_i32_0 = arith.constant 0 : i32
    return %arg0, %c0_i32 : i32, i32
  }
  func.func @transform_3(%arg0: i32, %arg1: i32) -> (i32, i32) {
    %c0_i32 = arith.constant 0 : i32
    %c0_i32_0 = arith.constant 0 : i32
    return %arg0, %c0_i32 : i32, i32
  }
}

</mosaic_0001>

<bundles_post_ra>
// kernel: tpu_custom_call.1
= control target key start
LH: loop header
LB: loop body
LE: loop exit
PB: predicated region body
PF: predicated region fallthrough
CT: control target
= control target key end

     0   :  { %9 = vsyncpa [#allocation3], 0  ;;  %s191_s0 = inlined_call_operand.hbm [shape: f32[8,256], index: 0, kind: input, shape index: {}]   ;;  %s192_s1 = inlined_call_operand.hbm [shape: f32[8,256], index: 1, kind: input, shape index: {}]   ;;  %s193_s2 = inlined_call_operand.vmem [shape: f32[8,1], index: 2, kind: output, shape index: {0}]   ;;  %s194_s3 = inlined_call_operand.vmem [shape: f32[8,1], index: 3, kind: output, shape index: {1}]  }
   0x1   :  { %10 = vsyncpa [#allocation5], 0  ;;  %s122_s12 = smov [#allocation2]   ;;  %s123_s14 = smov [#allocation4]  }
   0x2   :  { %s17_s13 = sshll.u32 %s122_s12, 4  ;;  %s27_s15 = sshll.u32 %s123_s14, 4  ;;  %s18_s13 = int_to_ptr.vmem [resolvable:$true] %s17_s13  ;;  %s28_s15 = int_to_ptr.vmem [resolvable:$true] %s27_s15 }
   0x3   :  { %s74_s18 = scalar_lea.hbm %s191_s0, 256 }
   0x4   :  { %p75_p0 = scmp.ne.s32.totalorder %s191_s0, %s74_s18  ;;  %p78_p1 = scmp.lt.u32.totalorder %s74_s18, %s191_s0 }
   0x6   :  { %p80_p2 = pnand %p78_p1, %p75_p0 }
   0x8   :  { %83 = shalt.err (!%p80_p2)
}
   0x9   :  { %s84_s23 = scalar_lea.vmem %s18_s13, 256  ;;  %p89_p4 = scmp.lt.s32.totalorder %s18_s13, %s18_s13 }
   0xa   :  { %p85_p3 = scmp.ne.s32.totalorder %s18_s13, %s84_s23  ;;  %p90_p5 = scmp.lt.s32.totalorder %s84_s23, %s84_s23 }
   0xc   :  { %p91_p6 = por %p90_p5, %p89_p4 }
   0xe   :  { %p92_p7 = pnand %p91_p6, %p85_p3 }
  0x10   :  { %95 = shalt.err (!%p92_p7)
}
  0x11   :  { %20 = dma.hbm_to_vmem [thread:$0]  %s191_s0, 256, %s18_s13, [#allocation3]  }
  0x12   :  { %s96_s28 = scalar_lea.hbm %s192_s1, 256 }
  0x13   :  { %p97_p8 = scmp.ne.s32.totalorder %s192_s1, %s96_s28  ;;  %p100_p9 = scmp.lt.u32.totalorder %s96_s28, %s192_s1 }
  0x15   :  { %p102_p10 = pnand %p100_p9, %p97_p8 }
  0x17   :  { %105 = shalt.err (!%p102_p10)
}
  0x18   :  { %s106_s6 = scalar_lea.vmem %s28_s15, 256  ;;  %p111_p12 = scmp.lt.s32.totalorder %s28_s15, %s28_s15 }
  0x19   :  { %p107_p11 = scmp.ne.s32.totalorder %s28_s15, %s106_s6  ;;  %p112_p13 = scmp.lt.s32.totalorder %s106_s6, %s106_s6 }
  0x1b   :  { %p113_p0 = por %p112_p13, %p111_p12 }
  0x1d   :  { %p114_p1 = pnand %p113_p0, %p107_p11 }
  0x1f   :  { %117 = shalt.err (!%p114_p1)
}
  0x20   :  { %30 = dma.hbm_to_vmem [thread:$0]  %s192_s1, 256, %s28_s15, [#allocation5]  }
  0x21   :  { %118 = dma.done.wait [#allocation3], 256  }
  0x22   :  { %119 = vsyncadd [#allocation3], 4294967040 }
  0x23   :  { %120 = dma.done.wait [#allocation5], 256  }
  0x24   :  { %121 = vsyncadd [#allocation5], 4294967040  ;;  %vm41_vm0 = vcmask 7168   ;;  %v124_v0 = vmov 0.0   ;;  %v45_v1 = vld [vmem:[#allocation2] sm:$0xff]  ;;  %v46_v2 = vld [vmem:[#allocation2 + $0x8] sm:$0xff] }
  0x25   :  { %42 = vst.msk [vmem:[%s193_s2] sm:$0xff] %vm41_vm0, %v124_v0  ;;  %43 = vst.msk [vmem:[%s194_s3] sm:$0xff] %vm41_vm0, %v124_v0  ;;  %v54_v3 = vld [vmem:[#allocation4] sm:$0xff]  ;;  %v47_v4 = vadd.f32 %v46_v2, %v45_v1  ;;  %v55_v5 = vld [vmem:[#allocation4 + $0x8] sm:$0xff] }
  0x26   :  { %v56_v6 = vadd.f32 %v55_v5, %v54_v3 }
  0x27   :  { %48 = vadd.xlane.f32.xlu0 %v47_v4 }
  0x2b   :  { %57 = vadd.xlane.f32.xlu0 %v56_v6 }
  0x2c   :  { %v44_v7 = vld [vmem:[%s193_s2] sm:$0xff] }
  0x2d   :  { %v53_v10 = vld [vmem:[%s194_s3] sm:$0xff] }
  0xb4   :  { %v49_v8 = vpop.xlane.xlu0 %48 }
  0xb5   :  { %v50_v9 = vadd.f32 %v49_v8, %v44_v7 }
  0xb7   :  { %52 = vst.msk [vmem:[%s193_s2] sm:$0xff] %vm41_vm0, %v50_v9 }
  0xb8   :  { %v58_v11 = vpop.xlane.xlu0 %57 }
  0xb9   :  { %v59_v12 = vadd.f32 %v58_v11, %v53_v10 }
  0xbb   :  { %60 = vst.msk [vmem:[%s194_s3] sm:$0xff] %vm41_vm0, %v59_v12 }
  0xbc   :  { %69 = vsyncpa [#allocation3], 1 }
  0xbd   :  { %70 = vsyncpa [#allocation5], 1 }

</bundles_post_ra>
